<compile_context>
chip_gen: v5e
topology: v5e:2x2
jax: 0.10.0
libtpu: 0.0.40
codegen_flags: <defaults>
</compile_context>

<pallas_src>
import math

import jax
import jax.numpy as jnp
from jax.experimental import pallas as pl
from jax.experimental.pallas import tpu as pltpu


def _pos_enc_kernel(x_ref, e_ref, o_ref):
    # x_ref : (tb, tn)  input tile
    # e_ref : (1,  tn)  positional-embedding row (broadcast over batch rows)
    # o_ref : (tb, tn)  output tile
    o_ref[...] = (x_ref[...] + e_ref[...]).astype(o_ref.dtype)


def _select_tiles(B, N, itemsize, *, lane_cap=2048, byte_budget=4 << 20):
    """Pick (tb, tn): lane-dense, dtype/byte-aware. No wrapper padding needed."""
    # Lane (last) axis: full extent when small, otherwise 128-multiple tiles.
    # Ragged tails are handled by Pallas boundary blocks (grid = cdiv).
    tn = N if N <= lane_cap else (lane_cap // 128) * 128

    # Sublane packing: 8 rows for 32-bit, 16 for bf16/f16, 32 for int8/fp8.
    sub = max(8, 32 // max(itemsize, 1))

    # Batch (sublane) axis from a byte budget -> ~4 MiB per buffer regardless
    # of dtype (amortizes per-grid-step overhead at v7x HBM bandwidth while
    # staying within scoped VMEM with double buffering).
    rows = max(sub, (byte_budget // max(tn * itemsize, 1)) // sub * sub)
    tb = B if B <= rows else rows

    # v7x has 2 TensorCores that only split work along parallel grid axes:
    # avoid collapsing mid-size problems to a 1x1 grid.
    if (pl.cdiv(B, tb) == 1 and pl.cdiv(N, tn) == 1
            and B >= 2 * sub and B * N * itemsize > (2 << 20)):
        tb = max(sub, ((B // 2) // sub) * sub)

    return tb, tn


def vanilla_positional_encodings(x, embeddings, *, tb=None, tn=None):
    """x: (..., num_positions, dim); embeddings: (1, num_positions, dim)."""
    *lead, P, D = x.shape
    assert embeddings.shape[-2:] == (P, D), (embeddings.shape, (P, D))
    assert all(d == 1 for d in embeddings.shape[:-2]), embeddings.shape

    B = int(math.prod(lead)) if lead else 1
    N = P * D
    out_dtype = jnp.result_type(x.dtype, embeddings.dtype)
    itemsize = jnp.dtype(x.dtype).itemsize

    x2 = x.reshape(B, N)
    e2 = embeddings.reshape(1, N)

    auto_tb, auto_tn = _select_tiles(B, N, itemsize)
    tb = auto_tb if tb is None else tb
    tn = auto_tn if tn is None else tn
    if tb < B:
        assert tb % 8 == 0, "row tile must be a multiple of 8 when tiling batch"
    if tn < N:
        assert tn % 128 == 0, "lane tile must be a multiple of 128 when tiling N"

    grid_b = pl.cdiv(B, tb)
    grid_n = pl.cdiv(N, tn)

    out = pl.pallas_call(
        _pos_enc_kernel,
        out_shape=jax.ShapeDtypeStruct((B, N), out_dtype),
        # Column axis outer, batch axis inner: the embedding block index is
        # constant across the inner loop, so its tile is DMA'd once per
        # column block instead of once per grid step.
        grid=(grid_n, grid_b),
        in_specs=[
            pl.BlockSpec((tb, tn), lambda j, i: (i, j)),   # input tile
            pl.BlockSpec((1, tn), lambda j, i: (0, j)),    # embedding row
        ],
        out_specs=pl.BlockSpec((tb, tn), lambda j, i: (i, j)),
        compiler_params=pltpu.CompilerParams(
            dimension_semantics=("parallel", "parallel"),
            # Headroom for ~4 MiB double-buffered x/out tiles on every
            # generation (v5e default scoped limit is only 16 MiB).
            vmem_limit_bytes=32 << 20,
        ),
    )(x2, e2)

    return out.reshape(*lead, P, D)


def _reference(x, embeddings):
    return x + embeddings


if __name__ == "__main__":
    key = jax.random.PRNGKey(0)
    k_x, k_e = jax.random.split(key)

    # Shapes implied by the module: (batch, num_positions, dim).
    batch, num_positions, dim = 2, 60, 32

    x = jax.random.normal(k_x, (batch, num_positions, dim), dtype=jnp.float32)
    embeddings = jax.random.normal(k_e, (1, num_positions, dim), dtype=jnp.float32)

    out = jax.block_until_ready(vanilla_positional_encodings(x, embeddings))
    ref = _reference(x, embeddings)
    assert out.shape == ref.shape, out.shape
    assert jnp.allclose(out, ref, atol=1e-6, rtol=1e-6), "mismatch vs reference"

    # Also exercise the ragged boundary-block path (grid = cdiv, no wrapper
    # padding/slicing): B=20 with tb=8 -> partial last row block; N=1920 with
    # tn=1024 -> partial last column block.
    x_b = jax.random.normal(k_x, (20, num_positions, dim), dtype=jnp.float32)
    out_b = jax.block_until_ready(
        vanilla_positional_encodings(x_b, embeddings, tb=8, tn=1024))
    assert jnp.allclose(out_b, _reference(x_b, embeddings), atol=1e-6, rtol=1e-6), \
        "mismatch vs reference (boundary-tile path)"

    print("KERNEL_OK")
</pallas_src>

<mosaic_0001>
module attributes {stable_mosaic.version = 11 : i64} {
  func.func @_pos_enc_kernel(%arg0: i32, %arg1: i32, %arg2: memref<2x1920xf32, #tpu.memory_space<vmem>>, %arg3: memref<1x1920xf32, #tpu.memory_space<vmem>>, %arg4: memref<2x1920xf32, #tpu.memory_space<vmem>>) attributes {dimension_semantics = [#tpu.dimension_semantics<parallel>, #tpu.dimension_semantics<parallel>], iteration_bounds = array<i64: 1, 1>, scalar_prefetch = 0 : i64, scratch_operands = 0 : i64, tpu.core_type = #tpu.core_type<tc>, window_params = [{transform_indices = @transform_0, window_bounds = array<i64: 2, 1920>}, {transform_indices = @transform_1, window_bounds = array<i64: 1, 1920>}, {transform_indices = @transform_2, window_bounds = array<i64: 2, 1920>}]} {
    %c0 = arith.constant 0 : index
    %c0_0 = arith.constant 0 : index
    %0 = vector.load %arg2[%c0, %c0_0] : memref<2x1920xf32, #tpu.memory_space<vmem>>, vector<2x1920xf32>
    %c0_1 = arith.constant 0 : index
    %c0_2 = arith.constant 0 : index
    %1 = vector.load %arg3[%c0_1, %c0_2] : memref<1x1920xf32, #tpu.memory_space<vmem>>, vector<1x1920xf32>
    %2 = vector.broadcast %1 : vector<1x1920xf32> to vector<2x1920xf32>
    %3 = arith.addf %0, %2 : vector<2x1920xf32>
    %c0_3 = arith.constant 0 : index
    %c0_4 = arith.constant 0 : index
    %4 = vector.load %arg4[%c0_3, %c0_4] : memref<2x1920xf32, #tpu.memory_space<vmem>>, vector<2x1920xf32>
    tpu.vector_store %arg4[%c0_3, %c0_4], %3 {strides = array<i32>} : memref<2x1920xf32, #tpu.memory_space<vmem>>, vector<2x1920xf32>,
    return
  }
  func.func @transform_0(%arg0: i32, %arg1: i32) -> (i32, i32) {
    %c0_i32 = arith.constant 0 : i32
    return %arg1, %arg0 : i32, i32
  }
  func.func @transform_1(%arg0: i32, %arg1: i32) -> (i32, i32) {
    %c0_i32 = arith.constant 0 : i32
    %c0_i32_0 = arith.constant 0 : i32
    return %c0_i32, %arg0 : i32, i32
  }
  func.func @transform_2(%arg0: i32, %arg1: i32) -> (i32, i32) {
    %c0_i32 = arith.constant 0 : i32
    return %arg1, %arg0 : i32, i32
  }
}

</mosaic_0001>

<bundles_post_ra>
// kernel: tpu_custom_call.1
= control target key start
LH: loop header
LB: loop body
LE: loop exit
PB: predicated region body
PF: predicated region fallthrough
CT: control target
= control target key end

     0   :  { %7 = vsyncpa [#allocation3], 0  ;;  %s237_s0 = inlined_call_operand.hbm [shape: f32[2,1920], index: 0, kind: input, shape index: {}]   ;;  %s238_s1 = inlined_call_operand.hbm [shape: f32[1,1920], index: 1, kind: input, shape index: {}]   ;;  %s239_s2 = inlined_call_operand.hbm [shape: f32[2,1920], index: 2, kind: output, shape index: {}]  }
   0x1   :  { %8 = vsyncpa [#allocation6], 0 }
   0x2   :  { %9 = vsyncpa [#allocation4], 0  ;;  %s15_s11 = sshll.u32 %s237_s0, 4  ;;  %s199_s12 = smov [#allocation2]   ;;  %s16_s11 = int_to_ptr.hbm [resolvable:$true] %s15_s11 }
   0x3   :  { %s17_s13 = sshll.u32 %s199_s12, 4  ;;  %s26_s16 = sshll.u32 %s238_s1, 4  ;;  %s18_s13 = int_to_ptr.vmem [resolvable:$true] %s17_s13  ;;  %s27_s16 = int_to_ptr.hbm [resolvable:$true] %s26_s16 }
   0x4   :  { %20 = dma.hbm_to_vmem [thread:$0]  %s16_s11, 480, %s18_s13, [#allocation3]  }
   0x5   :  { %s200_s17 = smov [#allocation5]  }
   0x6   :  { %s28_s18 = sshll.u32 %s200_s17, 4  ;;  %s29_s18 = int_to_ptr.vmem [resolvable:$true] %s28_s18 }
   0x7   :  { %31 = dma.hbm_to_vmem [thread:$0]  %s27_s16, 240, %s29_s18, [#allocation6]  }
   0x8   :  { %193 = dma.done.wait [#allocation3], 480  }
   0x9   :  { %194 = vsyncadd [#allocation3], 4294966816 }
   0xa   :  { %195 = dma.done.wait [#allocation6], 240  }
   0xb   :  { %196 = vsyncadd [#allocation6], 4294967056  ;;  %v44_v0 = vld [vmem:[#allocation5] sm:$0xff]  ;;  %vm74_vm0 = vcmask 1041408   ;;  %vm76_vm1 = vcmask 1045508   ;;  %vm78_vm2 = vcmask 1043456  }
   0xc   :  { %v48_v1 = vperm.slane %v44_v0, 0  ;;  %v49_v2 = vperm.slane %v44_v0, 1  ;;  %v50_v3 = vperm.slane %v44_v0, 2  ;;  %v51_v4 = vperm.slane %v44_v0, 3  ;;  %v45_v5 = vld [vmem:[#allocation5 + $0x8] sm:$0xff]  ;;  %v42_v33 = vld [vmem:[#allocation2 + $0x10] sm:$0xff] }
   0xd   :  { %v52_v6 = vperm.slane %v44_v0, 4  ;;  %v53_v7 = vperm.slane %v44_v0, 5  ;;  %v54_v8 = vperm.slane %v44_v0, 6  ;;  %v55_v9 = vperm.slane %v44_v0, 7  ;;  %v40_v14 = vld [vmem:[#allocation2] sm:$0xff]  ;;  %v41_v21 = vld [vmem:[#allocation2 + $0x8] sm:$0xff] }
   0xe   :  { %v63_v10 = vrot.slane %v49_v2, 6  ;;  %v64_v11 = vrot.slane %v50_v3, 4  ;;  %v65_v12 = vrot.slane %v51_v4, 2  ;;  %v56_v13 = vperm.slane %v45_v5, 0  ;;  %v43_v42 = vld [vmem:[#allocation2 + $0x18] sm:$0x3f] }
   0xf   :  { %v66_v15 = vrot.slane %v53_v7, 6  ;;  %v67_v16 = vrot.slane %v54_v8, 4  ;;  %v68_v17 = vrot.slane %v55_v9, 2  ;;  %v57_v18 = vperm.slane %v45_v5, 1  ;;  %s201_s0 = smov [#allocation7]   ;;  %s107_s21 = sshll.u32 %s239_s2, 4  ;;  %s108_s21 = int_to_ptr.hbm [resolvable:$true] %s107_s21 }
  0x10   :  { %v75_v19 = vsel %vm74_vm0, %v48_v1, %v63_v10  ;;  %v77_v20 = vsel %vm76_vm1, %v64_v11, %v65_v12  ;;  %v58_v22 = vperm.slane %v45_v5, 2  ;;  %v59_v23 = vperm.slane %v45_v5, 3  ;;  %s105_s1 = sshll.u32 %s201_s0, 4  ;;  %s106_s1 = int_to_ptr.vmem [resolvable:$true] %s105_s1 }
  0x11   :  { %v79_v24 = vsel %vm78_vm2, %v75_v19, %v77_v20  ;;  %v80_v25 = vsel %vm74_vm0, %v52_v6, %v66_v15  ;;  %v81_v26 = vsel %vm76_vm1, %v67_v16, %v68_v17  ;;  %v69_v27 = vrot.slane %v57_v18, 6 }
  0x12   :  { %v92_v28 = vadd.f32 %v79_v24, %v40_v14  ;;  %v82_v29 = vsel %vm78_vm2, %v80_v25, %v81_v26  ;;  %v70_v30 = vrot.slane %v58_v22, 4  ;;  %v71_v31 = vrot.slane %v59_v23, 2 }
  0x13   :  { %v93_v32 = vadd.f32 %v82_v29, %v41_v21  ;;  %v83_v34 = vsel %vm74_vm0, %v56_v13, %v69_v27  ;;  %v60_v35 = vperm.slane %v45_v5, 4  ;;  %v61_v36 = vperm.slane %v45_v5, 5 }
  0x14   :  { %96 = vst [vmem:[#allocation7] sm:$0xff] %v92_v28  ;;  %v84_v37 = vsel %vm76_vm1, %v70_v30, %v71_v31  ;;  %v62_v38 = vperm.slane %v45_v5, 6 }
  0x15   :  { %97 = vst [vmem:[#allocation7 + $0x8] sm:$0xff] %v93_v32  ;;  %v85_v39 = vsel %vm78_vm2, %v83_v34, %v84_v37  ;;  %v72_v40 = vrot.slane %v61_v36, 6 }
  0x16   :  { %v94_v41 = vadd.f32 %v85_v39, %v42_v33  ;;  %v73_v43 = vrot.slane %v62_v38, 4 }
  0x17   :  { %v86_v44 = vsel %vm74_vm0, %v60_v35, %v72_v40 }
  0x18   :  { %98 = vst [vmem:[#allocation7 + $0x10] sm:$0xff] %v94_v41  ;;  %v87_v45 = vsel %vm78_vm2, %v86_v44, %v73_v43 }
  0x19   :  { %v95_v46 = vadd.f32 %v87_v45, %v43_v42 }
  0x1b   :  { %99 = vst [vmem:[#allocation7 + $0x18] sm:$0x3f] %v95_v46 }
  0x1c   :  { %110 = dma.vmem_to_hbm [thread:$0]  %s106_s1, 480, %s108_s21, [#allocation4]  }
  0x1d   :  { %197 = dma.done.wait [#allocation4], 480  }
  0x1e   :  { %198 = vsyncadd [#allocation4], 4294966816 }
  0x1f   :  { %115 = vsyncpa [#allocation3], 1 }
  0x20   :  { %116 = vsyncpa [#allocation6], 1 }
  0x21   :  { %117 = vsyncpa [#allocation4], 1 }

</bundles_post_ra>
